<compile_context>
chip_gen: v7x
topology: tpu7x:2x2x1
jax: 0.10.0
libtpu: 0.0.40
codegen_flags: <defaults>
</compile_context>

<pallas_src>
import functools
from collections import defaultdict
from enum import Enum

import jax
import jax.numpy as jnp
from jax.experimental import pallas as pl
from jax.experimental.pallas import tpu as pltpu


class LocalityLevel(Enum):
    Instance = 0
    Patch = 1
    Points = 2
    PointsPatch = 3
    InstancePatch = 4


EPS = 1e-12                                              # F.normalize eps
MASK_VALUE = -0.7 * float(jnp.finfo(jnp.float32).max)    # removes self-similarity from the LSE

# VMEM policy: v7x has 64 MiB physical VMEM (v5e/v6e: 128 MiB).  Keep the compiler limit below
# ~56 MiB and budget the per-grid-step working set below ~36 MiB so double-buffering plus
# compiler scratch fit on every generation.
VMEM_LIMIT_BYTES = 48 * 1024 * 1024
VMEM_BUDGET_BYTES = 36 * 1024 * 1024


def _compiler_params(n_grid_axes=1):
    return pltpu.CompilerParams(
        dimension_semantics=("parallel",) * n_grid_axes,
        vmem_limit_bytes=VMEM_LIMIT_BYTES)


# ----------------------------------------------------------------------------
# small helpers
# ----------------------------------------------------------------------------
def _l2n(x):
    """L2-normalize along the last axis (matches F.normalize(eps=1e-12))."""
    ss = jnp.sum(x * x, axis=-1, keepdims=True)
    return x * jax.lax.rsqrt(jnp.maximum(ss, EPS * EPS))


def _lse_last(x):
    """Numerically stable log-sum-exp over the last axis."""
    m = jnp.max(x, axis=-1)
    return m + jnp.log(jnp.sum(jnp.exp(x - m[..., None]), axis=-1))


def _masked_mean(x, m):
    return jnp.sum(x * m) / jnp.maximum(jnp.sum(m), 1.0)


def _pick_bt(b, per_elem_bytes, budget_bytes=VMEM_BUDGET_BYTES, cap=64):
    """Largest divisor of b with bt * per_elem_bytes <= budget (and bt <= cap)."""
    limit = int(max(1, min(cap, budget_bytes // max(int(per_elem_bytes), 1))))
    if b <= limit:
        return b
    for t in range(limit, 0, -1):
        if b % t == 0:
            return t
    return 1


def _pick_row_tile(n_rows, per_row_bytes, budget_bytes=VMEM_BUDGET_BYTES, cap=1024):
    """Row tile for the instance kernel: divisor of n_rows, multiple of 8, VMEM budgeted."""
    limit = int(max(8, min(cap, budget_bytes // max(int(per_row_bytes), 1))))
    if n_rows <= limit:
        return n_rows
    limit = (limit // 8) * 8
    best = 0
    for t in range(8, limit + 1, 8):
        if n_rows % t == 0:
            best = t
    # TODO(synk): if 2B has no aligned divisor (or is huge), this falls back to one tile;
    # a flash-style online-LSE over column tiles would bound VMEM fully.
    return best if best > 0 else n_rows


# ----------------------------------------------------------------------------
# Kernels
# ----------------------------------------------------------------------------
def _instance_ce_kernel(x_ref, loss_ref, *, temperature):
    # x_ref:    (2B, D) L2-normalized [v1; v2] instance embeddings, bf16 (resident across grid).
    # loss_ref: (1, 1, Rt) per-row CE losses for this row tile.
    inv_t = 1.0 / temperature
    n2 = x_ref.shape[0]
    nb = n2 // 2
    rt = loss_ref.shape[2]
    off = pl.program_id(0) * rt
    rows = x_ref[pl.ds(pl.multiple_of(off, rt), rt), :]               # (Rt, D) bf16
    logits = jax.lax.dot_general(
        rows, x_ref[...], (((1,), (1,)), ((), ())),
        preferred_element_type=jnp.float32) * inv_t                   # (Rt, 2B) f32
    r = jax.lax.broadcasted_iota(jnp.int32, (rt, n2), 0) + off        # global row index
    c = jax.lax.broadcasted_iota(jnp.int32, (rt, n2), 1)
    logits = jnp.where(c == r, MASK_VALUE, logits)                    # drop self-similarity
    pos = jnp.where(r < nb, r + nb, r - nb)                           # positive-pair column
    tgt = jnp.sum(jnp.where(c == pos, logits, 0.0), axis=-1)          # (Rt,)
    loss_ref[...] = (_lse_last(logits) - tgt)[None, None, :]


def _patch_ce_kernel(v1_ref, v2_ref, loss_ref, *, temperature):
    # v*_ref:   (Bt, P, D) raw patch embeddings (bf16); normalized here in f32.
    # loss_ref: (1, Bt, 2P).
    inv_t = 1.0 / temperature
    p = v1_ref.shape[1]
    m2p = 2 * p
    x1 = _l2n(v1_ref[...].astype(jnp.float32))
    x2 = _l2n(v2_ref[...].astype(jnp.float32))
    x = jnp.concatenate([x1, x2], axis=1).astype(jnp.bfloat16)        # (Bt, 2P, D)
    logits = jnp.einsum('bid,bjd->bij', x, x,
                        preferred_element_type=jnp.float32) * inv_t   # (Bt, 2P, 2P)
    r = jax.lax.broadcasted_iota(jnp.int32, (m2p, m2p), 0)
    c = jax.lax.broadcasted_iota(jnp.int32, (m2p, m2p), 1)
    logits = jnp.where((r == c)[None], MASK_VALUE, logits)
    pos = jnp.where(r < p, r + p, r - p)
    tgt = jnp.sum(jnp.where((c == pos)[None], logits, 0.0), axis=-1)  # (Bt, 2P)
    loss_ref[...] = (_lse_last(logits) - tgt)[None]


def _point_patch_kernel(pe1_ref, pe2_ref, pt1_ref, pt2_ref, loss_ref, *, temperature):
    # pe*:      (Bt, P, D) raw patch embeddings (bf16, not normalized — per reference).
    # pt*:      (Bt, N, D) raw point embeddings (native layout, contraction over D).
    # loss_ref: (1, Bt, 4N) — columns [pe1|pt1, pe1|pt2, pe2|pt1, pe2|pt2].
    inv_t = 1.0 / temperature
    p = pe1_ref.shape[1]
    n = pt1_ref.shape[1]
    s = n // p
    p_i = jax.lax.broadcasted_iota(jnp.int32, (p, n), 0)
    n_i = jax.lax.broadcasted_iota(jnp.int32, (p, n), 1)
    is_pos = ((n_i >= p_i * s) & (n_i < (p_i + 1) * s))[None]         # point p*S+s -> patch p

    def ce(pe, pt_ref):
        lg = jnp.einsum('bpd,bnd->bpn', pe, pt_ref[...],
                        preferred_element_type=jnp.float32) * inv_t   # (Bt, P, N)
        tgt = jnp.sum(jnp.where(is_pos, lg, 0.0), axis=1)             # (Bt, N)
        m = jnp.max(lg, axis=1)
        lse = m + jnp.log(jnp.sum(jnp.exp(lg - m[:, None, :]), axis=1))
        return lse - tgt

    pe1 = pe1_ref[...]
    pe2 = pe2_ref[...]
    out = jnp.concatenate([ce(pe1, pt1_ref), ce(pe1, pt2_ref),
                           ce(pe2, pt1_ref), ce(pe2, pt2_ref)], axis=-1)   # (Bt, 4N)
    loss_ref[...] = out[None]


def _instance_patch_kernel(ins_ref, pe1_ref, pe2_ref, loss_ref, *, temperature):
    # ins_ref:  (2B, D) pre-normalized [ins1; ins2] bf16 class matrix (resident across grid).
    # pe*:      (Bt, P, D) raw patch embeddings (bf16); normalized here.
    # loss_ref: (1, Bt, 4P) — columns [ins1|pe1, ins1|pe2, ins2|pe1, ins2|pe2].
    inv_t = 1.0 / temperature
    nb = ins_ref.shape[0] // 2
    bt, p, d = pe1_ref.shape
    m2p = 2 * p
    p1 = _l2n(pe1_ref[...].astype(jnp.float32)).astype(jnp.bfloat16)
    p2 = _l2n(pe2_ref[...].astype(jnp.float32)).astype(jnp.bfloat16)
    pf = jnp.concatenate([p1, p2], axis=1).reshape(bt * m2p, d)       # (Bt*2P, D)
    # One large matmul (M = Bt*2P) instead of Bt small batched matmuls.
    logits = jax.lax.dot_general(
        pf, ins_ref[...], (((1,), (1,)), ((), ())),
        preferred_element_type=jnp.float32) * inv_t                   # (Bt*2P, 2B)
    logits = logits.reshape(bt, m2p, 2 * nb)
    off = pl.program_id(0) * bt
    row_b = jax.lax.broadcasted_iota(jnp.int32, (bt, m2p, nb), 0) + off
    col = jax.lax.broadcasted_iota(jnp.int32, (bt, m2p, nb), 2)
    is_pos = col == row_b                                             # target class = same element
    l1 = logits[:, :, :nb]                                            # vs. instance view 1
    l2 = logits[:, :, nb:]                                            # vs. instance view 2
    tgt1 = jnp.sum(jnp.where(is_pos, l1, 0.0), axis=-1)
    tgt2 = jnp.sum(jnp.where(is_pos, l2, 0.0), axis=-1)
    out = jnp.concatenate([_lse_last(l1) - tgt1, _lse_last(l2) - tgt2], axis=-1)  # (Bt, 4P)
    loss_ref[...] = out[None]


# ----------------------------------------------------------------------------
# Loss wrappers (pallas_call + masked-mean glue)
# ----------------------------------------------------------------------------
def instance_contrastive_loss(v1_emb, v2_emb, temperature):
    b, d = v1_emb.shape
    n2 = 2 * b
    # Normalize once in f32 (tiny (B,D) op), ship bf16: half the DMA, MXU-ready dtype.
    x = jnp.concatenate([_l2n(v1_emb.astype(jnp.float32)),
                         _l2n(v2_emb.astype(jnp.float32))], axis=0).astype(jnp.bfloat16)
    per_row = 3 * n2 * 4 + d * 2                       # logits row + intermediates + row slice
    rt = _pick_row_tile(n2, per_row,
                        budget_bytes=max(VMEM_BUDGET_BYTES - 2 * n2 * d * 2, 1 << 20))
    n_tiles = n2 // rt
    losses = pl.pallas_call(
        functools.partial(_instance_ce_kernel, temperature=float(temperature)),
        grid=(n_tiles,),
        out_shape=jax.ShapeDtypeStruct((n_tiles, 1, rt), jnp.float32),
        in_specs=[pl.BlockSpec((n2, d), lambda i: (0, 0))],
        out_specs=pl.BlockSpec((1, 1, rt), lambda i: (i, 0, 0)),
        compiler_params=_compiler_params(),
    )(x)
    return {"instance_ce": jnp.mean(losses)}


def patch_contrastive_loss(x1, x2, temperature):
    v1_emb, v1_counts = x1
    v2_emb, v2_counts = x2
    b, d, p = v1_emb.shape
    m2p = 2 * p
    # (B,D,P) -> (B,P,D) fused with the bf16 cast (half-sized HBM copy; D stays the lane axis).
    v1_t = jnp.transpose(v1_emb, (0, 2, 1)).astype(jnp.bfloat16)
    v2_t = jnp.transpose(v2_emb, (0, 2, 1)).astype(jnp.bfloat16)
    per_elem = (2 * 2 * p * d * 2        # two bf16 inputs, double-buffered
                + m2p * d * (4 + 2)      # f32 normalized + bf16 concat copies
                + m2p * m2p * 4          # f32 logits
                + 2 * m2p * 4)           # output
    bt = _pick_bt(b, per_elem)
    losses = pl.pallas_call(
        functools.partial(_patch_ce_kernel, temperature=float(temperature)),
        grid=(b // bt,),
        out_shape=jax.ShapeDtypeStruct((b // bt, bt, m2p), jnp.float32),
        in_specs=[pl.BlockSpec((bt, p, d), lambda i: (i, 0, 0)),
                  pl.BlockSpec((bt, p, d), lambda i: (i, 0, 0))],
        out_specs=pl.BlockSpec((1, bt, m2p), lambda i: (i, 0, 0)),
        compiler_params=_compiler_params(),
    )(v1_t, v2_t)
    losses = losses.reshape(b, m2p)
    valid = jnp.concatenate([v1_counts != 0, v2_counts != 0], axis=1).astype(jnp.float32)
    return {"patch_ce": _masked_mean(losses, valid)}


def point_patch_loss(x1, x2, temperature):
    v1_pe, _v1_ps, v1_pt, v1_ss = x1
    v2_pe, _v2_ps, v2_pt, v2_ss = x2
    b, d, p = v1_pe.shape
    n = v1_pt.shape[1]
    s = n // p
    pe1 = jnp.transpose(v1_pe, (0, 2, 1)).astype(jnp.bfloat16)   # (B, P, D)
    pe2 = jnp.transpose(v2_pe, (0, 2, 1)).astype(jnp.bfloat16)
    pt1 = v1_pt.astype(jnp.bfloat16)                              # native (B, N, D)
    pt2 = v2_pt.astype(jnp.bfloat16)
    per_elem = (2 * 2 * (p + n) * d * 2  # four bf16 inputs, double-buffered
                + 2 * p * n * 4          # ~two live f32 logit blocks
                + 2 * 4 * n * 4)         # output
    bt = _pick_bt(b, per_elem)
    losses = pl.pallas_call(
        functools.partial(_point_patch_kernel, temperature=float(temperature)),
        grid=(b // bt,),
        out_shape=jax.ShapeDtypeStruct((b // bt, bt, 4 * n), jnp.float32),
        in_specs=[pl.BlockSpec((bt, p, d), lambda i: (i, 0, 0)),
                  pl.BlockSpec((bt, p, d), lambda i: (i, 0, 0)),
                  pl.BlockSpec((bt, n, d), lambda i: (i, 0, 0)),
                  pl.BlockSpec((bt, n, d), lambda i: (i, 0, 0))],
        out_specs=pl.BlockSpec((1, bt, 4 * n), lambda i: (i, 0, 0)),
        compiler_params=_compiler_params(),
    )(pe1, pe2, pt1, pt2)
    losses = losses.reshape(b, 4 * n)

    s_idx = jnp.arange(s)[None, None, :]
    valid1 = (s_idx < v1_ss[:, :, None]).reshape(b, n).astype(jnp.float32)
    valid2 = (s_idx < v2_ss[:, :, None]).reshape(b, n).astype(jnp.float32)
    return {
        "point_patch_v1":  _masked_mean(losses[:, 0 * n:1 * n], valid1),  # pe1 vs pts1
        "point_patch_v2":  _masked_mean(losses[:, 3 * n:4 * n], valid2),  # pe2 vs pts2
        "point_patch_v12": _masked_mean(losses[:, 1 * n:2 * n], valid2),  # pe1 vs pts2
        "point_patch_v21": _masked_mean(losses[:, 2 * n:3 * n], valid1),  # pe2 vs pts1
    }


def instance_patch_loss(x1, x2, temperature):
    v1_ins, v1_pe, v1_ps = x1
    v2_ins, v2_pe, v2_ps = x2
    b, d, p = v1_pe.shape
    # Pre-normalize instances once (tiny), ship a single bf16 (2B, D) class matrix.
    ins = jnp.concatenate([_l2n(v1_ins.astype(jnp.float32)),
                           _l2n(v2_ins.astype(jnp.float32))], axis=0).astype(jnp.bfloat16)
    pe1 = jnp.transpose(v1_pe, (0, 2, 1)).astype(jnp.bfloat16)   # (B, P, D)
    pe2 = jnp.transpose(v2_pe, (0, 2, 1)).astype(jnp.bfloat16)
    fixed = 2 * 2 * b * d * 2            # resident (2B, D) bf16 class matrix (double-buffered)
    per_elem = (2 * 2 * p * d * 2        # patch inputs, double-buffered
                + 2 * p * d * (4 + 2)    # normalized f32 + flattened bf16 copies
                + 2 * 2 * p * 2 * b * 4  # f32 logits (+ reshape copy)
                + 2 * 4 * p * 4)         # output
    bt = _pick_bt(b, per_elem, budget_bytes=max(VMEM_BUDGET_BYTES - fixed, 1 << 20))
    losses = pl.pallas_call(
        functools.partial(_instance_patch_kernel, temperature=float(temperature)),
        grid=(b // bt,),
        out_shape=jax.ShapeDtypeStruct((b // bt, bt, 4 * p), jnp.float32),
        in_specs=[pl.BlockSpec((2 * b, d), lambda i: (0, 0)),
                  pl.BlockSpec((bt, p, d), lambda i: (i, 0, 0)),
                  pl.BlockSpec((bt, p, d), lambda i: (i, 0, 0))],
        out_specs=pl.BlockSpec((1, bt, 4 * p), lambda i: (i, 0, 0)),
        compiler_params=_compiler_params(),
    )(ins, pe1, pe2)
    losses = losses.reshape(b, 4 * p)

    valid1 = (v1_ps != 0).astype(jnp.float32)   # (B, P)
    valid2 = (v2_ps != 0).astype(jnp.float32)
    return {
        "ins_patch_v1":  _masked_mean(losses[:, 0 * p:1 * p], valid1),   # ins1 vs patch1
        "ins_patch_v2":  _masked_mean(losses[:, 3 * p:4 * p], valid2),   # ins2 vs patch2
        "ins_patch_v12": _masked_mean(losses[:, 1 * p:2 * p], valid2),   # ins1 vs patch2
        "ins_patch_v21": _masked_mean(losses[:, 2 * p:3 * p], valid1),   # ins2 vs patch1
    }


# ----------------------------------------------------------------------------
# forward() equivalent
# ----------------------------------------------------------------------------
def multi_locality_contrastive_forward(v1, v2, locality_levels, temperature,
                                       sup_loss=False, weights=None, scale_factor=1.0):
    if weights is None:
        weights = defaultdict(lambda: 1.0)
    loss_dict = {}
    loss = jnp.float32(0.0)

    if LocalityLevel.Instance in locality_levels:
        ins = instance_contrastive_loss(v1[LocalityLevel.Instance][0],
                                        v2[LocalityLevel.Instance][0], temperature)
        ins["instance_ce"] = ins["instance_ce"] / scale_factor
        loss_dict.update(ins)
        loss = loss + ins["instance_ce"] * weights[LocalityLevel.Instance]

    if LocalityLevel.Patch in locality_levels:
        if sup_loss:
            # TODO(synk): supervised variant requires torch.nonzero-style dynamic gather.
            raise NotImplementedError("patch_contrastive_loss_sup not supported")
        pat = patch_contrastive_loss(v1[LocalityLevel.Patch], v2[LocalityLevel.Patch],
                                     temperature)
        pat["patch_ce"] = pat["patch_ce"] / scale_factor
        loss_dict.update(pat)
        loss = loss + pat["patch_ce"] * weights[LocalityLevel.Patch]

    if LocalityLevel.PointsPatch in locality_levels:
        v1_ = tuple(v1[LocalityLevel.Patch]) + tuple(v1[LocalityLevel.Points])
        v2_ = tuple(v2[LocalityLevel.Patch]) + tuple(v2[LocalityLevel.Points])
        pp = point_patch_loss(v1_, v2_, temperature)
        pp = {k: val / scale_factor for k, val in pp.items()}
        loss_dict.update(pp)
        loss = loss + sum(pp.values()) * weights[LocalityLevel.PointsPatch]

    if LocalityLevel.InstancePatch in locality_levels:
        v1_ = tuple(v1[LocalityLevel.Instance]) + tuple(v1[LocalityLevel.Patch])
        v2_ = tuple(v2[LocalityLevel.Instance]) + tuple(v2[LocalityLevel.Patch])
        ip = instance_patch_loss(v1_, v2_, temperature)
        ip = {k: val / scale_factor for k, val in ip.items()}
        loss_dict.update(ip)
        loss = loss + sum(ip.values()) * weights[LocalityLevel.InstancePatch]

    return loss, loss_dict


# ----------------------------------------------------------------------------
if __name__ == "__main__":
    key = jax.random.PRNGKey(0)
    ks = jax.random.split(key, 10)
    B, D, P, S = 2, 32, 8, 4
    N = P * S

    v1_counts = jax.random.randint(ks[2], (B, P), 0, 4).at[:, 0].set(1)
    v2_counts = jax.random.randint(ks[7], (B, P), 0, 4).at[:, 0].set(1)
    v1_ss = jax.random.randint(ks[4], (B, P), 0, S + 1).at[:, 0].set(S)
    v2_ss = jax.random.randint(ks[9], (B, P), 0, S + 1).at[:, 0].set(S)

    v1 = {
        LocalityLevel.Instance: (jax.random.normal(ks[0], (B, D), jnp.float32),),
        LocalityLevel.Patch: (jax.random.normal(ks[1], (B, D, P), jnp.float32), v1_counts),
        LocalityLevel.Points: (jax.random.normal(ks[3], (B, N, D), jnp.float32), v1_ss),
    }
    v2 = {
        LocalityLevel.Instance: (jax.random.normal(ks[5], (B, D), jnp.float32),),
        LocalityLevel.Patch: (jax.random.normal(ks[6], (B, D, P), jnp.float32), v2_counts),
        LocalityLevel.Points: (jax.random.normal(ks[8], (B, N, D), jnp.float32), v2_ss),
    }

    levels = [LocalityLevel.Instance, LocalityLevel.Patch,
              LocalityLevel.PointsPatch, LocalityLevel.InstancePatch]

    loss, loss_dict = multi_locality_contrastive_forward(
        v1, v2, levels, temperature=0.1, sup_loss=False, scale_factor=1.0)

    loss = jax.block_until_ready(loss)
    for v in loss_dict.values():
        jax.block_until_ready(v)

    assert bool(jnp.isfinite(loss)), "loss is not finite"
    assert all(bool(jnp.isfinite(v)) for v in loss_dict.values()), "loss term not finite"
    print("KERNEL_OK")
</pallas_src>

<mosaic_0001>
module attributes {stable_mosaic.version = 11 : i64} {
  func.func @_instance_ce_kernel(%arg0: i32, %arg1: memref<4x32xbf16, #tpu.memory_space<vmem>>, %arg2: memref<1x1x4xf32, #tpu.memory_space<vmem>>) attributes {dimension_semantics = [#tpu.dimension_semantics<parallel>], iteration_bounds = array<i64: 1>, scalar_prefetch = 0 : i64, scratch_operands = 0 : i64, tpu.core_type = #tpu.core_type<tc>, window_params = [{pipeline_mode = #tpu.pipeline_mode<synchronous>, transform_indices = @transform_0, window_bounds = array<i64: 4, 32>}, {transform_indices = @transform_1, window_bounds = array<i64: 1, 1, 4>}]} {
    %c4_i32 = arith.constant 4 : i32
    %0 = arith.muli %arg0, %c4_i32 : i32
    %1 = tpu.assume_multiple %0, 4 : i32
    %2 = arith.index_cast %1 : i32 to index
    %c0 = arith.constant 0 : index
    %3 = vector.load %arg1[%2, %c0] : memref<4x32xbf16, #tpu.memory_space<vmem>>, vector<4x32xbf16>
    %c0_0 = arith.constant 0 : index
    %c0_1 = arith.constant 0 : index
    %4 = vector.load %arg1[%c0_0, %c0_1] : memref<4x32xbf16, #tpu.memory_space<vmem>>, vector<4x32xbf16>
    %cst = arith.constant dense<0.000000e+00> : vector<4x4xf32>
    %5 = tpu.matmul %3, %4, %cst {dimension_numbers = #tpu.dot_dimension_numbers<[1], [1], [0], [0], [0, 0, 1, 0], [], []>} : vector<4x32xbf16>, vector<4x32xbf16>, vector<4x4xf32> -> vector<4x4xf32>
    %cst_2 = arith.constant 1.000000e+01 : f32
    %6 = vector.broadcast %cst_2 : f32 to vector<4x4xf32>
    %7 = arith.mulf %5, %6 : vector<4x4xf32>
    %8 = tpu.iota {dimensions = array<i32: 0>} : vector<4x4xi32>
    %9 = vector.broadcast %0 : i32 to vector<4x4xi32>
    %10 = arith.addi %8, %9 : vector<4x4xi32>
    %11 = tpu.iota {dimensions = array<i32: 1>} : vector<4x4xi32>
    %12 = arith.cmpi eq, %11, %10 : vector<4x4xi32>
    %cst_3 = arith.constant -2.38197633E+38 : f32
    %13 = vector.broadcast %cst_3 : f32 to vector<4x4xf32>
    %14 = arith.select %12, %13, %7 : vector<4x4xi1>, vector<4x4xf32>
    %c2_i32 = arith.constant 2 : i32
    %15 = vector.broadcast %c2_i32 : i32 to vector<4x4xi32>
    %16 = arith.cmpi slt, %10, %15 : vector<4x4xi32>
    %c2_i32_4 = arith.constant 2 : i32
    %17 = vector.broadcast %c2_i32_4 : i32 to vector<4x4xi32>
    %18 = arith.addi %10, %17 : vector<4x4xi32>
    %c2_i32_5 = arith.constant 2 : i32
    %19 = vector.broadcast %c2_i32_5 : i32 to vector<4x4xi32>
    %20 = arith.subi %10, %19 : vector<4x4xi32>
    %21 = arith.select %16, %18, %20 : vector<4x4xi1>, vector<4x4xi32>
    %22 = arith.cmpi eq, %11, %21 : vector<4x4xi32>
    %cst_6 = arith.constant 0.000000e+00 : f32
    %23 = vector.broadcast %cst_6 : f32 to vector<4x4xf32>
    %24 = arith.select %22, %14, %23 : vector<4x4xi1>, vector<4x4xf32>
    %cst_7 = arith.constant dense<0.000000e+00> : vector<4xf32>
    %25 = vector.multi_reduction <add>, %24, %cst_7 [1] : vector<4x4xf32> to vector<4xf32>
    %cst_8 = arith.constant dense<0xFF800000> : vector<4xf32>
    %26 = vector.multi_reduction <maximumf>, %14, %cst_8 [1] : vector<4x4xf32> to vector<4xf32>
    %27 = vector.shape_cast %26 : vector<4xf32> to vector<4x1xf32>
    %28 = vector.broadcast %27 : vector<4x1xf32> to vector<4x4xf32>
    %29 = arith.subf %14, %28 : vector<4x4xf32>
    %30 = math.exp %29 : vector<4x4xf32>
    %cst_9 = arith.constant dense<0.000000e+00> : vector<4xf32>
    %31 = vector.multi_reduction <add>, %30, %cst_9 [1] : vector<4x4xf32> to vector<4xf32>
    %32 = math.log %31 : vector<4xf32>
    %33 = arith.addf %26, %32 : vector<4xf32>
    %34 = arith.subf %33, %25 : vector<4xf32>
    %35 = vector.shape_cast %34 : vector<4xf32> to vector<1x1x4xf32>
    %c0_10 = arith.constant 0 : index
    %c0_11 = arith.constant 0 : index
    %c0_12 = arith.constant 0 : index
    %36 = vector.load %arg2[%c0_10, %c0_11, %c0_12] : memref<1x1x4xf32, #tpu.memory_space<vmem>>, vector<1x1x4xf32>
    tpu.vector_store %arg2[%c0_10, %c0_11, %c0_12], %35 {strides = array<i32>} : memref<1x1x4xf32, #tpu.memory_space<vmem>>, vector<1x1x4xf32>,
    return
  }
  func.func @transform_0(%arg0: i32) -> (i32, i32) {
    %c0_i32 = arith.constant 0 : i32
    %c0_i32_0 = arith.constant 0 : i32
    %c0_i32_1 = arith.constant 0 : i32
    return %c0_i32, %c0_i32_0 : i32, i32
  }
  func.func @transform_1(%arg0: i32) -> (i32, i32, i32) {
    %c0_i32 = arith.constant 0 : i32
    %c0_i32_0 = arith.constant 0 : i32
    %c0_i32_1 = arith.constant 0 : i32
    return %arg0, %c0_i32, %c0_i32_0 : i32, i32, i32
  }
}

</mosaic_0001>

<bundles_post_ra>
// kernel: tpu_custom_call.1
= control target key start
LH: loop header
LB: loop body
LE: loop exit
PB: predicated region body
PF: predicated region fallthrough
CT: control target
= control target key end

     0   :  { %6 = vsyncpa [#allocation3], 0  ;;  %s237_s0 = inlined_call_operand.hbm [shape: bf16[4,32], index: 0, kind: input, shape index: {}]   ;;  %s238_s1 = inlined_call_operand.hbm [shape: f32[1,1,4], index: 1, kind: output, shape index: {}]  }
   0x1   :  { %7 = vsyncpa [#allocation4], 0  ;;  %s199_s6 = smov [#allocation2]   ;;  %s151_s10 = scalar_lea.hbm %s237_s0, 32 }
   0x2   :  { %s14_s7 = sshll.u32 %s199_s6, 4  ;;  %p152_p0 = scmp.ne.s32.totalorder %s237_s0, %s151_s10  ;;  %s15_s7 = int_to_ptr.vmem [resolvable:$true] %s14_s7 }
   0x3   :  { %p155_p1 = scmp.lt.u32.totalorder %s151_s10, %s237_s0 }
   0x5   :  { %p157_p2 = pnand %p155_p1, %p152_p0 }
   0x7   :  { %160 = shalt.err (!%p157_p2)
}
   0x8   :  { %s161_s15 = scalar_lea.vmem %s15_s7, 32  ;;  %p166_p4 = scmp.lt.s32.totalorder %s15_s7, %s15_s7 }
   0x9   :  { %p162_p3 = scmp.ne.s32.totalorder %s15_s7, %s161_s15  ;;  %p167_p5 = scmp.lt.s32.totalorder %s161_s15, %s161_s15 }
   0xb   :  { %p168_p6 = por %p167_p5, %p166_p4 }
   0xd   :  { %p169_p7 = pnand %p168_p6, %p162_p3 }
   0xf   :  { %172 = shalt.err (!%p169_p7)
}
  0x10   :  { %17 = dma.hbm_to_vmem [thread:$0]  %s237_s0, 32, %s15_s7, [#allocation3]  }
  0x11   :  { %195 = dma.done.wait [#allocation3], 32  }
  0x12   :  { %196 = vsyncadd [#allocation3], 4294967264  ;;  %v200_v0 = vmov 0.0   ;;  %vm201_vm0 = vmmov 0   ;;  %vm29_vm1 = vcmask 261120   ;;  %v77_v4 = vlaneseq  ;;  %s202_s0 = smov [#allocation5]  }
  0x13   :  { %137 = vmatprep.subr.bf16.mxu0 %v200_v0  ;;  %139 = vmatprep.mubr.msk.bf16.mxu0 %vm201_vm0, %v200_v0  ;;  %v28_v1 = vld [vmem:[#allocation2] sm:$0x3]  ;;  %vm91_vm4 = vcmask 27648   ;;  %s122_s18 = sshll.u32 %s202_s0, 4  ;;  %vm114_vm6 = vcmask 24576   ;;  %s123_s18 = int_to_ptr.vmem [resolvable:$true] %s122_s18 }
  0x14   :  { %v34_v2 = vsel %vm29_vm1, %v28_v1, 0  ;;  %v27_v3 = vld [vmem:[#allocation2] sm:$0x3]  ;;  %v78_v5 = vshrl.u32 %v77_v4, 7  ;;  %v82_v8 = vand.u32 127, %v77_v4  ;;  %s173_s19 = scalar_lea.vmem %s123_s18, 16  ;;  %p178_p9 = scmp.lt.s32.totalorder %s123_s18, %s123_s18 }
  0x15   :  { %138 = vmatpush3.bf16.xpose.msra.mxu0 %v34_v2  ;;  %p174_p8 = scmp.ne.s32.totalorder %s123_s18, %s173_s19  ;;  %s177_s20 = scalar_lea.vmem %s123_s18, 32 }
  0x16   :  { %v86_v6 = vadd.s32 2, %v78_v5  ;;  %v134_v7 = vadd.s32 4294967294, %v78_v5  ;;  %vm85_vm2 = vcmp.lt.s32.totalorder %v78_v5, 2  ;;  %vm83_vm3 = vcmp.eq.s32.totalorder %v82_v8, %v78_v5  ;;  %p179_p10 = scmp.lt.s32.totalorder %s177_s20, %s173_s19 }
  0x17   :  { %v111_v28 = vsub.s32 %v82_v8, %v78_v5 }
  0x18   :  { %v88_v9 = vsel %vm85_vm2, %v86_v6, %v134_v7  ;;  %p180_p11 = por %p179_p10, %p178_p9 }
  0x19   :  { %vm89_vm5 = vcmp.eq.s32.totalorder %v82_v8, %v88_v9 }
  0x1a   :  { %p181_p12 = pnand %p180_p11, %p174_p8 }
  0x1c   :  { %140 = vmatmul.mubr.msk.bf16.vlgmr.msra.gmra.mrb[0].mxu0 %vm29_vm1, %v27_v3 }
  0xef   :  { %v70_v10 = vpop.f32.mrb[0].mxu0 }
  0xf0   :  { %v76_v11 = vmul.f32 10.0, %v70_v10  ;;  %v141_v12 = vpop.f32.mrb[1].mxu0 }
  0xf1   :  { %v73_v13 = vpop.f32.mrb[2].mxu0 }
  0xf2   :  { %v142_v14 = vpop.f32.mrb[3].mxu0  ;;  %v84_v15 = vsel %vm83_vm3, -2.3819763e+38, %v76_v11 }
  0xf3   :  { %v95_v16 = vsel %vm91_vm4, %v84_v15, -inf  ;;  %v90_v17 = vsel %vm89_vm5, %v84_v15, 0.0 }
  0xf4   :  { %96 = vmax.xlane.f32.xlu0 %v95_v16  ;;  %v92_v18 = vsel %vm91_vm4, %v90_v17, 0.0 }
  0xf5   :  { %93 = vadd.xlane.f32.xlu1 %v92_v18 }
 0x181   :  { %v97_v19 = vpop.xlane.xlu0 %96 }
 0x182   :  { %v98_v20 = vsub.f32 %v84_v15, %v97_v19  ;;  %v94_v29 = vpop.xlane.xlu1 %93 }
 0x184   :  { %v99_v21 = vmul.f32 1.442695, %v98_v20 }
 0x186   :  { %147 = vpow2.f32 %v99_v21 }
 0x190   :  { %v148_v22 = vpop.eup %147 }
 0x191   :  { %v101_v23 = vsel %vm91_vm4, %v148_v22, 0.0 }
 0x192   :  { %102 = vadd.xlane.f32.xlu0 %v101_v23 }
 0x21f   :  { %v103_v24 = vpop.xlane.xlu0 %102 }
 0x220   :  { %149 = vlog2.f32 %v103_v24 }
 0x22a   :  { %v150_v25 = vpop.eup %149 }
 0x22b   :  { %v105_v26 = vmul.f32 0.6931472, %v150_v25 }
 0x22d   :  { %v106_v27 = vadd.f32 %v105_v26, %v97_v19 }
 0x22f   :  { %v107_v30 = vsub.f32 %v106_v27, %v94_v29 }
 0x231   :  { %v112_v31 = vrot.slane %v107_v30, %v111_v28 }
 0x233   :  { %115 = vst.msk [vmem:[#allocation5] sm:$0x1] %vm114_vm6, %v112_v31 }
 0x234   :  { %184 = shalt.err (!%p181_p12)
}
 0x235   :  { %s185_s23 = scalar_lea.hbm %s238_s1, 16 }
 0x236   :  { %p186_p13 = scmp.ne.s32.totalorder %s238_s1, %s185_s23  ;;  %p189_p0 = scmp.lt.u32.totalorder %s185_s23, %s238_s1 }
 0x238   :  { %p191_p1 = pnand %p189_p0, %p186_p13 }
 0x23a   :  { %194 = shalt.err (!%p191_p1)
}
 0x23b   :  { %125 = dma.vmem_to_hbm [thread:$0]  %s123_s18, 16, %s238_s1, [#allocation4]  }
 0x23c   :  { %197 = dma.done.wait [#allocation4], 16  }
 0x23d   :  { %198 = vsyncadd [#allocation4], 4294967280 }
 0x23e   :  { %129 = vsyncpa [#allocation3], 1 }
 0x23f   :  { %130 = vsyncpa [#allocation4], 1 }

</bundles_post_ra>
